<compile_context>
chip_gen: v5e
topology: v5e:2x2
jax: 0.10.0
libtpu: 0.0.40
codegen_flags: <defaults>
</compile_context>

<pallas_src>
import functools

import jax
import jax.numpy as jnp
from jax.experimental import pallas as pl
from jax.experimental.pallas import tpu as pltpu

# Activation constants (match torch.nn defaults)
_SELU_ALPHA = 1.6732632423543772848170429916717
_SELU_SCALE = 1.0507009873554804934193349852946
_ELU_ALPHA = 1.0
_HARDSHRINK_LAMBDA = 0.5

# (fan_in, fan_out) of the six Linear layers in the Sequential.
_DIMS = ((7, 2), (2, 6), (6, 2), (2, 5), (5, 2), (2, 2))


def _param_layout():
    """Static offsets of each layer's weight / bias in the packed f32 slab."""
    offs = []
    off = 0
    for fin, fout in _DIMS:
        offs.append((off, off + fin * fout))  # (weight_offset, bias_offset)
        off += fin * fout + fout
    prelu_off = off
    off += 1
    return tuple(offs), prelu_off, off


_OFFS, _PRELU_OFF, _NPARAMS = _param_layout()


def _nncov2_kernel(p_ref, x_ref, o_ref):
    # p_ref: (_NPARAMS,) f32 in SMEM (scalar path).
    # x_ref: (7, TB) f32 in VMEM — feature rows, batch on lanes.
    # o_ref: (2, TB) f32 in VMEM — lane-dense output tile.
    h = [x_ref[k:k + 1, :] for k in range(7)]  # list of (1, TB) lane-dense rows

    def linear(rows, layer):
        """Unrolled VPU FMA chain: out[j] = sum_k w[j,k]*rows[k] + b[j]."""
        fin, fout = _DIMS[layer]
        w_off, b_off = _OFFS[layer]
        out = []
        for j in range(fout):
            r = p_ref[w_off + j * fin] * rows[0]
            for k in range(1, fin):
                r = r + p_ref[w_off + j * fin + k] * rows[k]
            out.append(r + p_ref[b_off + j])
        return out

    # Linear(7, 2) + PReLU (single shared parameter)
    h = linear(h, 0)
    a = p_ref[_PRELU_OFF]
    h = [jnp.maximum(r, 0.0) + a * jnp.minimum(r, 0.0) for r in h]

    # Linear(2, 6) + SELU
    h = linear(h, 1)
    h = [_SELU_SCALE * (jnp.maximum(r, 0.0)
                        + _SELU_ALPHA * (jnp.exp(jnp.minimum(r, 0.0)) - 1.0))
         for r in h]

    # Linear(6, 2) + ELU(alpha=1)
    h = linear(h, 2)
    h = [jnp.maximum(r, 0.0)
         + _ELU_ALPHA * (jnp.exp(jnp.minimum(r, 0.0)) - 1.0) for r in h]

    # Linear(2, 5) + Hardshrink(lambda=0.5)
    h = linear(h, 3)
    h = [jnp.where(jnp.abs(r) > _HARDSHRINK_LAMBDA, r, 0.0) for r in h]

    # Linear(5, 2) + Tanh
    h = linear(h, 4)
    h = [jnp.tanh(r) for r in h]

    # Linear(2, 2)
    h = linear(h, 5)

    o_ref[...] = jnp.concatenate(h, axis=0)  # (2, TB) lane-dense store


def _round_up(n, m):
    return ((n + m - 1) // m) * m


@functools.partial(jax.jit, static_argnames=("block_b",))
def nncov2_forward(x, packed_params, *, block_b=1024):
    """x: (B, 7) float32, packed_params: (_NPARAMS,) float32 -> (B, 2) float32."""
    B = x.shape[0]
    tb = min(block_b, _round_up(max(B, 1), 128))   # lane-tile (multiple of 128)
    b_pad = _round_up(max(B, 1), tb)

    # Batch on lanes: hand the kernel x^T, zero-padded to a lane multiple.
    xt = jnp.pad(x.astype(jnp.float32).T, ((0, 0), (0, b_pad - B)))

    out_t = pl.pallas_call(
        _nncov2_kernel,
        out_shape=jax.ShapeDtypeStruct((2, b_pad), jnp.float32),
        grid=(b_pad // tb,),
        in_specs=[
            pl.BlockSpec(memory_space=pltpu.MemorySpace.SMEM),  # packed params
            pl.BlockSpec((7, tb), lambda i: (0, i)),            # x^T batch tile
        ],
        out_specs=pl.BlockSpec((2, tb), lambda i: (0, i)),
        compiler_params=pltpu.CompilerParams(
            dimension_semantics=("parallel",)),
    )(packed_params, xt)

    # Keep the public (B, 2) contract: slice off padding and transpose back.
    return out_t[:, :B].T


def init_params(key):
    """PyTorch-default Linear init U[-1/sqrt(fan_in), 1/sqrt(fan_in)];
    weights stored torch-style as (fan_out, fan_in); PReLU a = 0.25."""
    keys = jax.random.split(key, 2 * len(_DIMS))
    layers = []
    for i, (fin, fout) in enumerate(_DIMS):
        bound = fin ** -0.5
        w = jax.random.uniform(keys[2 * i], (fout, fin), jnp.float32, -bound, bound)
        b = jax.random.uniform(keys[2 * i + 1], (fout,), jnp.float32, -bound, bound)
        layers.append((w, b))
    prelu_a = jnp.float32(0.25)
    return layers, prelu_a


def pack_params(layers, prelu_a):
    """Flatten all weights/biases + PReLU scalar into one f32 slab for SMEM."""
    parts = []
    for w, b in layers:
        parts.append(jnp.reshape(w, (-1,)))
        parts.append(jnp.reshape(b, (-1,)))
    parts.append(jnp.reshape(prelu_a, (1,)))
    packed = jnp.concatenate(parts).astype(jnp.float32)
    assert packed.shape == (_NPARAMS,)
    return packed


def reference_forward(x, layers, prelu_a):
    """Pure-JAX reference of the same forward pass (sanity check)."""
    (w1, b1), (w2, b2), (w3, b3), (w4, b4), (w5, b5), (w6, b6) = layers
    h = x @ w1.T + b1
    h = jnp.maximum(h, 0.0) + prelu_a * jnp.minimum(h, 0.0)
    h = h @ w2.T + b2
    h = _SELU_SCALE * (jnp.maximum(h, 0.0)
                       + _SELU_ALPHA * (jnp.exp(jnp.minimum(h, 0.0)) - 1.0))
    h = h @ w3.T + b3
    h = jnp.maximum(h, 0.0) + _ELU_ALPHA * (jnp.exp(jnp.minimum(h, 0.0)) - 1.0)
    h = h @ w4.T + b4
    h = jnp.where(jnp.abs(h) > _HARDSHRINK_LAMBDA, h, 0.0)
    h = h @ w5.T + b5
    h = jnp.tanh(h)
    return h @ w6.T + b6


if __name__ == "__main__":
    key = jax.random.PRNGKey(0)
    k_x, k_p = jax.random.split(key)
    B = 8
    x = jax.random.normal(k_x, (B, 7), dtype=jnp.float32)

    layers, prelu_a = init_params(k_p)
    packed = pack_params(layers, prelu_a)

    out = nncov2_forward(x, packed)
    out = jax.block_until_ready(out)

    ref = reference_forward(x, layers, prelu_a)
    assert out.shape == (B, 2)
    assert jnp.allclose(out, ref, atol=1e-5, rtol=1e-5), float(
        jnp.max(jnp.abs(out - ref)))
    print("KERNEL_OK")
</pallas_src>

<mosaic_0001>
module attributes {stable_mosaic.version = 11 : i64} {
  func.func @_nncov2_kernel(%arg0: i32, %arg1: memref<82xf32, #tpu.memory_space<smem>>, %arg2: memref<7x128xf32, #tpu.memory_space<vmem>>, %arg3: memref<2x128xf32, #tpu.memory_space<vmem>>) attributes {dimension_semantics = [#tpu.dimension_semantics<parallel>], iteration_bounds = array<i64: 1>, scalar_prefetch = 0 : i64, scratch_operands = 0 : i64, tpu.core_type = #tpu.core_type<tc>, window_params = [{transform_indices = @transform_0, window_bounds = array<i64: 82>}, {transform_indices = @transform_1, window_bounds = array<i64: 7, 128>}, {transform_indices = @transform_2, window_bounds = array<i64: 2, 128>}]} {
    %c0 = arith.constant 0 : index
    %c0_0 = arith.constant 0 : index
    %0 = vector.load %arg2[%c0, %c0_0] : memref<7x128xf32, #tpu.memory_space<vmem>>, vector<1x128xf32>
    %c1 = arith.constant 1 : index
    %c0_1 = arith.constant 0 : index
    %1 = vector.load %arg2[%c1, %c0_1] : memref<7x128xf32, #tpu.memory_space<vmem>>, vector<1x128xf32>
    %c2 = arith.constant 2 : index
    %c0_2 = arith.constant 0 : index
    %2 = vector.load %arg2[%c2, %c0_2] : memref<7x128xf32, #tpu.memory_space<vmem>>, vector<1x128xf32>
    %c3 = arith.constant 3 : index
    %c0_3 = arith.constant 0 : index
    %3 = vector.load %arg2[%c3, %c0_3] : memref<7x128xf32, #tpu.memory_space<vmem>>, vector<1x128xf32>
    %c4 = arith.constant 4 : index
    %c0_4 = arith.constant 0 : index
    %4 = vector.load %arg2[%c4, %c0_4] : memref<7x128xf32, #tpu.memory_space<vmem>>, vector<1x128xf32>
    %c5 = arith.constant 5 : index
    %c0_5 = arith.constant 0 : index
    %5 = vector.load %arg2[%c5, %c0_5] : memref<7x128xf32, #tpu.memory_space<vmem>>, vector<1x128xf32>
    %c6 = arith.constant 6 : index
    %c0_6 = arith.constant 0 : index
    %6 = vector.load %arg2[%c6, %c0_6] : memref<7x128xf32, #tpu.memory_space<vmem>>, vector<1x128xf32>
    %c0_7 = arith.constant 0 : index
    %7 = memref.load %arg1[%c0_7] : memref<82xf32, #tpu.memory_space<smem>>
    %8 = vector.broadcast %7 : f32 to vector<1x128xf32>
    %9 = arith.mulf %8, %0 : vector<1x128xf32>
    %c1_8 = arith.constant 1 : index
    %10 = memref.load %arg1[%c1_8] : memref<82xf32, #tpu.memory_space<smem>>
    %11 = vector.broadcast %10 : f32 to vector<1x128xf32>
    %12 = arith.mulf %11, %1 : vector<1x128xf32>
    %13 = arith.addf %9, %12 : vector<1x128xf32>
    %c2_9 = arith.constant 2 : index
    %14 = memref.load %arg1[%c2_9] : memref<82xf32, #tpu.memory_space<smem>>
    %15 = vector.broadcast %14 : f32 to vector<1x128xf32>
    %16 = arith.mulf %15, %2 : vector<1x128xf32>
    %17 = arith.addf %13, %16 : vector<1x128xf32>
    %c3_10 = arith.constant 3 : index
    %18 = memref.load %arg1[%c3_10] : memref<82xf32, #tpu.memory_space<smem>>
    %19 = vector.broadcast %18 : f32 to vector<1x128xf32>
    %20 = arith.mulf %19, %3 : vector<1x128xf32>
    %21 = arith.addf %17, %20 : vector<1x128xf32>
    %c4_11 = arith.constant 4 : index
    %22 = memref.load %arg1[%c4_11] : memref<82xf32, #tpu.memory_space<smem>>
    %23 = vector.broadcast %22 : f32 to vector<1x128xf32>
    %24 = arith.mulf %23, %4 : vector<1x128xf32>
    %25 = arith.addf %21, %24 : vector<1x128xf32>
    %c5_12 = arith.constant 5 : index
    %26 = memref.load %arg1[%c5_12] : memref<82xf32, #tpu.memory_space<smem>>
    %27 = vector.broadcast %26 : f32 to vector<1x128xf32>
    %28 = arith.mulf %27, %5 : vector<1x128xf32>
    %29 = arith.addf %25, %28 : vector<1x128xf32>
    %c6_13 = arith.constant 6 : index
    %30 = memref.load %arg1[%c6_13] : memref<82xf32, #tpu.memory_space<smem>>
    %31 = vector.broadcast %30 : f32 to vector<1x128xf32>
    %32 = arith.mulf %31, %6 : vector<1x128xf32>
    %33 = arith.addf %29, %32 : vector<1x128xf32>
    %c14 = arith.constant 14 : index
    %34 = memref.load %arg1[%c14] : memref<82xf32, #tpu.memory_space<smem>>
    %35 = vector.broadcast %34 : f32 to vector<1x128xf32>
    %36 = arith.addf %33, %35 : vector<1x128xf32>
    %c7 = arith.constant 7 : index
    %37 = memref.load %arg1[%c7] : memref<82xf32, #tpu.memory_space<smem>>
    %38 = vector.broadcast %37 : f32 to vector<1x128xf32>
    %39 = arith.mulf %38, %0 : vector<1x128xf32>
    %c8 = arith.constant 8 : index
    %40 = memref.load %arg1[%c8] : memref<82xf32, #tpu.memory_space<smem>>
    %41 = vector.broadcast %40 : f32 to vector<1x128xf32>
    %42 = arith.mulf %41, %1 : vector<1x128xf32>
    %43 = arith.addf %39, %42 : vector<1x128xf32>
    %c9 = arith.constant 9 : index
    %44 = memref.load %arg1[%c9] : memref<82xf32, #tpu.memory_space<smem>>
    %45 = vector.broadcast %44 : f32 to vector<1x128xf32>
    %46 = arith.mulf %45, %2 : vector<1x128xf32>
    %47 = arith.addf %43, %46 : vector<1x128xf32>
    %c10 = arith.constant 10 : index
    %48 = memref.load %arg1[%c10] : memref<82xf32, #tpu.memory_space<smem>>
    %49 = vector.broadcast %48 : f32 to vector<1x128xf32>
    %50 = arith.mulf %49, %3 : vector<1x128xf32>
    %51 = arith.addf %47, %50 : vector<1x128xf32>
    %c11 = arith.constant 11 : index
    %52 = memref.load %arg1[%c11] : memref<82xf32, #tpu.memory_space<smem>>
    %53 = vector.broadcast %52 : f32 to vector<1x128xf32>
    %54 = arith.mulf %53, %4 : vector<1x128xf32>
    %55 = arith.addf %51, %54 : vector<1x128xf32>
    %c12 = arith.constant 12 : index
    %56 = memref.load %arg1[%c12] : memref<82xf32, #tpu.memory_space<smem>>
    %57 = vector.broadcast %56 : f32 to vector<1x128xf32>
    %58 = arith.mulf %57, %5 : vector<1x128xf32>
    %59 = arith.addf %55, %58 : vector<1x128xf32>
    %c13 = arith.constant 13 : index
    %60 = memref.load %arg1[%c13] : memref<82xf32, #tpu.memory_space<smem>>
    %61 = vector.broadcast %60 : f32 to vector<1x128xf32>
    %62 = arith.mulf %61, %6 : vector<1x128xf32>
    %63 = arith.addf %59, %62 : vector<1x128xf32>
    %c15 = arith.constant 15 : index
    %64 = memref.load %arg1[%c15] : memref<82xf32, #tpu.memory_space<smem>>
    %65 = vector.broadcast %64 : f32 to vector<1x128xf32>
    %66 = arith.addf %63, %65 : vector<1x128xf32>
    %c81 = arith.constant 81 : index
    %67 = memref.load %arg1[%c81] : memref<82xf32, #tpu.memory_space<smem>>
    %cst = arith.constant 0.000000e+00 : f32
    %68 = vector.broadcast %cst : f32 to vector<1x128xf32>
    %69 = arith.maximumf %36, %68 : vector<1x128xf32>
    %cst_14 = arith.constant 0.000000e+00 : f32
    %70 = vector.broadcast %cst_14 : f32 to vector<1x128xf32>
    %71 = arith.minimumf %36, %70 : vector<1x128xf32>
    %72 = vector.broadcast %67 : f32 to vector<1x128xf32>
    %73 = arith.mulf %72, %71 : vector<1x128xf32>
    %74 = arith.addf %69, %73 : vector<1x128xf32>
    %cst_15 = arith.constant 0.000000e+00 : f32
    %75 = vector.broadcast %cst_15 : f32 to vector<1x128xf32>
    %76 = arith.maximumf %66, %75 : vector<1x128xf32>
    %cst_16 = arith.constant 0.000000e+00 : f32
    %77 = vector.broadcast %cst_16 : f32 to vector<1x128xf32>
    %78 = arith.minimumf %66, %77 : vector<1x128xf32>
    %79 = vector.broadcast %67 : f32 to vector<1x128xf32>
    %80 = arith.mulf %79, %78 : vector<1x128xf32>
    %81 = arith.addf %76, %80 : vector<1x128xf32>
    %c16 = arith.constant 16 : index
    %82 = memref.load %arg1[%c16] : memref<82xf32, #tpu.memory_space<smem>>
    %83 = vector.broadcast %82 : f32 to vector<1x128xf32>
    %84 = arith.mulf %83, %74 : vector<1x128xf32>
    %c17 = arith.constant 17 : index
    %85 = memref.load %arg1[%c17] : memref<82xf32, #tpu.memory_space<smem>>
    %86 = vector.broadcast %85 : f32 to vector<1x128xf32>
    %87 = arith.mulf %86, %81 : vector<1x128xf32>
    %88 = arith.addf %84, %87 : vector<1x128xf32>
    %c28 = arith.constant 28 : index
    %89 = memref.load %arg1[%c28] : memref<82xf32, #tpu.memory_space<smem>>
    %90 = vector.broadcast %89 : f32 to vector<1x128xf32>
    %91 = arith.addf %88, %90 : vector<1x128xf32>
    %c18 = arith.constant 18 : index
    %92 = memref.load %arg1[%c18] : memref<82xf32, #tpu.memory_space<smem>>
    %93 = vector.broadcast %92 : f32 to vector<1x128xf32>
    %94 = arith.mulf %93, %74 : vector<1x128xf32>
    %c19 = arith.constant 19 : index
    %95 = memref.load %arg1[%c19] : memref<82xf32, #tpu.memory_space<smem>>
    %96 = vector.broadcast %95 : f32 to vector<1x128xf32>
    %97 = arith.mulf %96, %81 : vector<1x128xf32>
    %98 = arith.addf %94, %97 : vector<1x128xf32>
    %c29 = arith.constant 29 : index
    %99 = memref.load %arg1[%c29] : memref<82xf32, #tpu.memory_space<smem>>
    %100 = vector.broadcast %99 : f32 to vector<1x128xf32>
    %101 = arith.addf %98, %100 : vector<1x128xf32>
    %c20 = arith.constant 20 : index
    %102 = memref.load %arg1[%c20] : memref<82xf32, #tpu.memory_space<smem>>
    %103 = vector.broadcast %102 : f32 to vector<1x128xf32>
    %104 = arith.mulf %103, %74 : vector<1x128xf32>
    %c21 = arith.constant 21 : index
    %105 = memref.load %arg1[%c21] : memref<82xf32, #tpu.memory_space<smem>>
    %106 = vector.broadcast %105 : f32 to vector<1x128xf32>
    %107 = arith.mulf %106, %81 : vector<1x128xf32>
    %108 = arith.addf %104, %107 : vector<1x128xf32>
    %c30 = arith.constant 30 : index
    %109 = memref.load %arg1[%c30] : memref<82xf32, #tpu.memory_space<smem>>
    %110 = vector.broadcast %109 : f32 to vector<1x128xf32>
    %111 = arith.addf %108, %110 : vector<1x128xf32>
    %c22 = arith.constant 22 : index
    %112 = memref.load %arg1[%c22] : memref<82xf32, #tpu.memory_space<smem>>
    %113 = vector.broadcast %112 : f32 to vector<1x128xf32>
    %114 = arith.mulf %113, %74 : vector<1x128xf32>
    %c23 = arith.constant 23 : index
    %115 = memref.load %arg1[%c23] : memref<82xf32, #tpu.memory_space<smem>>
    %116 = vector.broadcast %115 : f32 to vector<1x128xf32>
    %117 = arith.mulf %116, %81 : vector<1x128xf32>
    %118 = arith.addf %114, %117 : vector<1x128xf32>
    %c31 = arith.constant 31 : index
    %119 = memref.load %arg1[%c31] : memref<82xf32, #tpu.memory_space<smem>>
    %120 = vector.broadcast %119 : f32 to vector<1x128xf32>
    %121 = arith.addf %118, %120 : vector<1x128xf32>
    %c24 = arith.constant 24 : index
    %122 = memref.load %arg1[%c24] : memref<82xf32, #tpu.memory_space<smem>>
    %123 = vector.broadcast %122 : f32 to vector<1x128xf32>
    %124 = arith.mulf %123, %74 : vector<1x128xf32>
    %c25 = arith.constant 25 : index
    %125 = memref.load %arg1[%c25] : memref<82xf32, #tpu.memory_space<smem>>
    %126 = vector.broadcast %125 : f32 to vector<1x128xf32>
    %127 = arith.mulf %126, %81 : vector<1x128xf32>
    %128 = arith.addf %124, %127 : vector<1x128xf32>
    %c32 = arith.constant 32 : index
    %129 = memref.load %arg1[%c32] : memref<82xf32, #tpu.memory_space<smem>>
    %130 = vector.broadcast %129 : f32 to vector<1x128xf32>
    %131 = arith.addf %128, %130 : vector<1x128xf32>
    %c26 = arith.constant 26 : index
    %132 = memref.load %arg1[%c26] : memref<82xf32, #tpu.memory_space<smem>>
    %133 = vector.broadcast %132 : f32 to vector<1x128xf32>
    %134 = arith.mulf %133, %74 : vector<1x128xf32>
    %c27 = arith.constant 27 : index
    %135 = memref.load %arg1[%c27] : memref<82xf32, #tpu.memory_space<smem>>
    %136 = vector.broadcast %135 : f32 to vector<1x128xf32>
    %137 = arith.mulf %136, %81 : vector<1x128xf32>
    %138 = arith.addf %134, %137 : vector<1x128xf32>
    %c33 = arith.constant 33 : index
    %139 = memref.load %arg1[%c33] : memref<82xf32, #tpu.memory_space<smem>>
    %140 = vector.broadcast %139 : f32 to vector<1x128xf32>
    %141 = arith.addf %138, %140 : vector<1x128xf32>
    %cst_17 = arith.constant 0.000000e+00 : f32
    %142 = vector.broadcast %cst_17 : f32 to vector<1x128xf32>
    %143 = arith.maximumf %91, %142 : vector<1x128xf32>
    %cst_18 = arith.constant 0.000000e+00 : f32
    %144 = vector.broadcast %cst_18 : f32 to vector<1x128xf32>
    %145 = arith.minimumf %91, %144 : vector<1x128xf32>
    %146 = math.exp %145 : vector<1x128xf32>
    %cst_19 = arith.constant 1.000000e+00 : f32
    %147 = vector.broadcast %cst_19 : f32 to vector<1x128xf32>
    %148 = arith.subf %146, %147 : vector<1x128xf32>
    %cst_20 = arith.constant 1.67326319 : f32
    %149 = vector.broadcast %cst_20 : f32 to vector<1x128xf32>
    %150 = arith.mulf %149, %148 : vector<1x128xf32>
    %151 = arith.addf %143, %150 : vector<1x128xf32>
    %cst_21 = arith.constant 1.05070102 : f32
    %152 = vector.broadcast %cst_21 : f32 to vector<1x128xf32>
    %153 = arith.mulf %152, %151 : vector<1x128xf32>
    %cst_22 = arith.constant 0.000000e+00 : f32
    %154 = vector.broadcast %cst_22 : f32 to vector<1x128xf32>
    %155 = arith.maximumf %101, %154 : vector<1x128xf32>
    %cst_23 = arith.constant 0.000000e+00 : f32
    %156 = vector.broadcast %cst_23 : f32 to vector<1x128xf32>
    %157 = arith.minimumf %101, %156 : vector<1x128xf32>
    %158 = math.exp %157 : vector<1x128xf32>
    %cst_24 = arith.constant 1.000000e+00 : f32
    %159 = vector.broadcast %cst_24 : f32 to vector<1x128xf32>
    %160 = arith.subf %158, %159 : vector<1x128xf32>
    %cst_25 = arith.constant 1.67326319 : f32
    %161 = vector.broadcast %cst_25 : f32 to vector<1x128xf32>
    %162 = arith.mulf %161, %160 : vector<1x128xf32>
    %163 = arith.addf %155, %162 : vector<1x128xf32>
    %cst_26 = arith.constant 1.05070102 : f32
    %164 = vector.broadcast %cst_26 : f32 to vector<1x128xf32>
    %165 = arith.mulf %164, %163 : vector<1x128xf32>
    %cst_27 = arith.constant 0.000000e+00 : f32
    %166 = vector.broadcast %cst_27 : f32 to vector<1x128xf32>
    %167 = arith.maximumf %111, %166 : vector<1x128xf32>
    %cst_28 = arith.constant 0.000000e+00 : f32
    %168 = vector.broadcast %cst_28 : f32 to vector<1x128xf32>
    %169 = arith.minimumf %111, %168 : vector<1x128xf32>
    %170 = math.exp %169 : vector<1x128xf32>
    %cst_29 = arith.constant 1.000000e+00 : f32
    %171 = vector.broadcast %cst_29 : f32 to vector<1x128xf32>
    %172 = arith.subf %170, %171 : vector<1x128xf32>
    %cst_30 = arith.constant 1.67326319 : f32
    %173 = vector.broadcast %cst_30 : f32 to vector<1x128xf32>
    %174 = arith.mulf %173, %172 : vector<1x128xf32>
    %175 = arith.addf %167, %174 : vector<1x128xf32>
    %cst_31 = arith.constant 1.05070102 : f32
    %176 = vector.broadcast %cst_31 : f32 to vector<1x128xf32>
    %177 = arith.mulf %176, %175 : vector<1x128xf32>
    %cst_32 = arith.constant 0.000000e+00 : f32
    %178 = vector.broadcast %cst_32 : f32 to vector<1x128xf32>
    %179 = arith.maximumf %121, %178 : vector<1x128xf32>
    %cst_33 = arith.constant 0.000000e+00 : f32
    %180 = vector.broadcast %cst_33 : f32 to vector<1x128xf32>
    %181 = arith.minimumf %121, %180 : vector<1x128xf32>
    %182 = math.exp %181 : vector<1x128xf32>
    %cst_34 = arith.constant 1.000000e+00 : f32
    %183 = vector.broadcast %cst_34 : f32 to vector<1x128xf32>
    %184 = arith.subf %182, %183 : vector<1x128xf32>
    %cst_35 = arith.constant 1.67326319 : f32
    %185 = vector.broadcast %cst_35 : f32 to vector<1x128xf32>
    %186 = arith.mulf %185, %184 : vector<1x128xf32>
    %187 = arith.addf %179, %186 : vector<1x128xf32>
    %cst_36 = arith.constant 1.05070102 : f32
    %188 = vector.broadcast %cst_36 : f32 to vector<1x128xf32>
    %189 = arith.mulf %188, %187 : vector<1x128xf32>
    %cst_37 = arith.constant 0.000000e+00 : f32
    %190 = vector.broadcast %cst_37 : f32 to vector<1x128xf32>
    %191 = arith.maximumf %131, %190 : vector<1x128xf32>
    %cst_38 = arith.constant 0.000000e+00 : f32
    %192 = vector.broadcast %cst_38 : f32 to vector<1x128xf32>
    %193 = arith.minimumf %131, %192 : vector<1x128xf32>
    %194 = math.exp %193 : vector<1x128xf32>
    %cst_39 = arith.constant 1.000000e+00 : f32
    %195 = vector.broadcast %cst_39 : f32 to vector<1x128xf32>
    %196 = arith.subf %194, %195 : vector<1x128xf32>
    %cst_40 = arith.constant 1.67326319 : f32
    %197 = vector.broadcast %cst_40 : f32 to vector<1x128xf32>
    %198 = arith.mulf %197, %196 : vector<1x128xf32>
    %199 = arith.addf %191, %198 : vector<1x128xf32>
    %cst_41 = arith.constant 1.05070102 : f32
    %200 = vector.broadcast %cst_41 : f32 to vector<1x128xf32>
    %201 = arith.mulf %200, %199 : vector<1x128xf32>
    %cst_42 = arith.constant 0.000000e+00 : f32
    %202 = vector.broadcast %cst_42 : f32 to vector<1x128xf32>
    %203 = arith.maximumf %141, %202 : vector<1x128xf32>
    %cst_43 = arith.constant 0.000000e+00 : f32
    %204 = vector.broadcast %cst_43 : f32 to vector<1x128xf32>
    %205 = arith.minimumf %141, %204 : vector<1x128xf32>
    %206 = math.exp %205 : vector<1x128xf32>
    %cst_44 = arith.constant 1.000000e+00 : f32
    %207 = vector.broadcast %cst_44 : f32 to vector<1x128xf32>
    %208 = arith.subf %206, %207 : vector<1x128xf32>
    %cst_45 = arith.constant 1.67326319 : f32
    %209 = vector.broadcast %cst_45 : f32 to vector<1x128xf32>
    %210 = arith.mulf %209, %208 : vector<1x128xf32>
    %211 = arith.addf %203, %210 : vector<1x128xf32>
    %cst_46 = arith.constant 1.05070102 : f32
    %212 = vector.broadcast %cst_46 : f32 to vector<1x128xf32>
    %213 = arith.mulf %212, %211 : vector<1x128xf32>
    %c34 = arith.constant 34 : index
    %214 = memref.load %arg1[%c34] : memref<82xf32, #tpu.memory_space<smem>>
    %215 = vector.broadcast %214 : f32 to vector<1x128xf32>
    %216 = arith.mulf %215, %153 : vector<1x128xf32>
    %c35 = arith.constant 35 : index
    %217 = memref.load %arg1[%c35] : memref<82xf32, #tpu.memory_space<smem>>
    %218 = vector.broadcast %217 : f32 to vector<1x128xf32>
    %219 = arith.mulf %218, %165 : vector<1x128xf32>
    %220 = arith.addf %216, %219 : vector<1x128xf32>
    %c36 = arith.constant 36 : index
    %221 = memref.load %arg1[%c36] : memref<82xf32, #tpu.memory_space<smem>>
    %222 = vector.broadcast %221 : f32 to vector<1x128xf32>
    %223 = arith.mulf %222, %177 : vector<1x128xf32>
    %224 = arith.addf %220, %223 : vector<1x128xf32>
    %c37 = arith.constant 37 : index
    %225 = memref.load %arg1[%c37] : memref<82xf32, #tpu.memory_space<smem>>
    %226 = vector.broadcast %225 : f32 to vector<1x128xf32>
    %227 = arith.mulf %226, %189 : vector<1x128xf32>
    %228 = arith.addf %224, %227 : vector<1x128xf32>
    %c38 = arith.constant 38 : index
    %229 = memref.load %arg1[%c38] : memref<82xf32, #tpu.memory_space<smem>>
    %230 = vector.broadcast %229 : f32 to vector<1x128xf32>
    %231 = arith.mulf %230, %201 : vector<1x128xf32>
    %232 = arith.addf %228, %231 : vector<1x128xf32>
    %c39 = arith.constant 39 : index
    %233 = memref.load %arg1[%c39] : memref<82xf32, #tpu.memory_space<smem>>
    %234 = vector.broadcast %233 : f32 to vector<1x128xf32>
    %235 = arith.mulf %234, %213 : vector<1x128xf32>
    %236 = arith.addf %232, %235 : vector<1x128xf32>
    %c46 = arith.constant 46 : index
    %237 = memref.load %arg1[%c46] : memref<82xf32, #tpu.memory_space<smem>>
    %238 = vector.broadcast %237 : f32 to vector<1x128xf32>
    %239 = arith.addf %236, %238 : vector<1x128xf32>
    %c40 = arith.constant 40 : index
    %240 = memref.load %arg1[%c40] : memref<82xf32, #tpu.memory_space<smem>>
    %241 = vector.broadcast %240 : f32 to vector<1x128xf32>
    %242 = arith.mulf %241, %153 : vector<1x128xf32>
    %c41 = arith.constant 41 : index
    %243 = memref.load %arg1[%c41] : memref<82xf32, #tpu.memory_space<smem>>
    %244 = vector.broadcast %243 : f32 to vector<1x128xf32>
    %245 = arith.mulf %244, %165 : vector<1x128xf32>
    %246 = arith.addf %242, %245 : vector<1x128xf32>
    %c42 = arith.constant 42 : index
    %247 = memref.load %arg1[%c42] : memref<82xf32, #tpu.memory_space<smem>>
    %248 = vector.broadcast %247 : f32 to vector<1x128xf32>
    %249 = arith.mulf %248, %177 : vector<1x128xf32>
    %250 = arith.addf %246, %249 : vector<1x128xf32>
    %c43 = arith.constant 43 : index
    %251 = memref.load %arg1[%c43] : memref<82xf32, #tpu.memory_space<smem>>
    %252 = vector.broadcast %251 : f32 to vector<1x128xf32>
    %253 = arith.mulf %252, %189 : vector<1x128xf32>
    %254 = arith.addf %250, %253 : vector<1x128xf32>
    %c44 = arith.constant 44 : index
    %255 = memref.load %arg1[%c44] : memref<82xf32, #tpu.memory_space<smem>>
    %256 = vector.broadcast %255 : f32 to vector<1x128xf32>
    %257 = arith.mulf %256, %201 : vector<1x128xf32>
    %258 = arith.addf %254, %257 : vector<1x128xf32>
    %c45 = arith.constant 45 : index
    %259 = memref.load %arg1[%c45] : memref<82xf32, #tpu.memory_space<smem>>
    %260 = vector.broadcast %259 : f32 to vector<1x128xf32>
    %261 = arith.mulf %260, %213 : vector<1x128xf32>
    %262 = arith.addf %258, %261 : vector<1x128xf32>
    %c47 = arith.constant 47 : index
    %263 = memref.load %arg1[%c47] : memref<82xf32, #tpu.memory_space<smem>>
    %264 = vector.broadcast %263 : f32 to vector<1x128xf32>
    %265 = arith.addf %262, %264 : vector<1x128xf32>
    %cst_47 = arith.constant 0.000000e+00 : f32
    %266 = vector.broadcast %cst_47 : f32 to vector<1x128xf32>
    %267 = arith.maximumf %239, %266 : vector<1x128xf32>
    %cst_48 = arith.constant 0.000000e+00 : f32
    %268 = vector.broadcast %cst_48 : f32 to vector<1x128xf32>
    %269 = arith.minimumf %239, %268 : vector<1x128xf32>
    %270 = math.exp %269 : vector<1x128xf32>
    %cst_49 = arith.constant 1.000000e+00 : f32
    %271 = vector.broadcast %cst_49 : f32 to vector<1x128xf32>
    %272 = arith.subf %270, %271 : vector<1x128xf32>
    %cst_50 = arith.constant 1.000000e+00 : f32
    %273 = vector.broadcast %cst_50 : f32 to vector<1x128xf32>
    %274 = arith.mulf %273, %272 : vector<1x128xf32>
    %275 = arith.addf %267, %274 : vector<1x128xf32>
    %cst_51 = arith.constant 0.000000e+00 : f32
    %276 = vector.broadcast %cst_51 : f32 to vector<1x128xf32>
    %277 = arith.maximumf %265, %276 : vector<1x128xf32>
    %cst_52 = arith.constant 0.000000e+00 : f32
    %278 = vector.broadcast %cst_52 : f32 to vector<1x128xf32>
    %279 = arith.minimumf %265, %278 : vector<1x128xf32>
    %280 = math.exp %279 : vector<1x128xf32>
    %cst_53 = arith.constant 1.000000e+00 : f32
    %281 = vector.broadcast %cst_53 : f32 to vector<1x128xf32>
    %282 = arith.subf %280, %281 : vector<1x128xf32>
    %cst_54 = arith.constant 1.000000e+00 : f32
    %283 = vector.broadcast %cst_54 : f32 to vector<1x128xf32>
    %284 = arith.mulf %283, %282 : vector<1x128xf32>
    %285 = arith.addf %277, %284 : vector<1x128xf32>
    %c48 = arith.constant 48 : index
    %286 = memref.load %arg1[%c48] : memref<82xf32, #tpu.memory_space<smem>>
    %287 = vector.broadcast %286 : f32 to vector<1x128xf32>
    %288 = arith.mulf %287, %275 : vector<1x128xf32>
    %c49 = arith.constant 49 : index
    %289 = memref.load %arg1[%c49] : memref<82xf32, #tpu.memory_space<smem>>
    %290 = vector.broadcast %289 : f32 to vector<1x128xf32>
    %291 = arith.mulf %290, %285 : vector<1x128xf32>
    %292 = arith.addf %288, %291 : vector<1x128xf32>
    %c58 = arith.constant 58 : index
    %293 = memref.load %arg1[%c58] : memref<82xf32, #tpu.memory_space<smem>>
    %294 = vector.broadcast %293 : f32 to vector<1x128xf32>
    %295 = arith.addf %292, %294 : vector<1x128xf32>
    %c50 = arith.constant 50 : index
    %296 = memref.load %arg1[%c50] : memref<82xf32, #tpu.memory_space<smem>>
    %297 = vector.broadcast %296 : f32 to vector<1x128xf32>
    %298 = arith.mulf %297, %275 : vector<1x128xf32>
    %c51 = arith.constant 51 : index
    %299 = memref.load %arg1[%c51] : memref<82xf32, #tpu.memory_space<smem>>
    %300 = vector.broadcast %299 : f32 to vector<1x128xf32>
    %301 = arith.mulf %300, %285 : vector<1x128xf32>
    %302 = arith.addf %298, %301 : vector<1x128xf32>
    %c59 = arith.constant 59 : index
    %303 = memref.load %arg1[%c59] : memref<82xf32, #tpu.memory_space<smem>>
    %304 = vector.broadcast %303 : f32 to vector<1x128xf32>
    %305 = arith.addf %302, %304 : vector<1x128xf32>
    %c52 = arith.constant 52 : index
    %306 = memref.load %arg1[%c52] : memref<82xf32, #tpu.memory_space<smem>>
    %307 = vector.broadcast %306 : f32 to vector<1x128xf32>
    %308 = arith.mulf %307, %275 : vector<1x128xf32>
    %c53 = arith.constant 53 : index
    %309 = memref.load %arg1[%c53] : memref<82xf32, #tpu.memory_space<smem>>
    %310 = vector.broadcast %309 : f32 to vector<1x128xf32>
    %311 = arith.mulf %310, %285 : vector<1x128xf32>
    %312 = arith.addf %308, %311 : vector<1x128xf32>
    %c60 = arith.constant 60 : index
    %313 = memref.load %arg1[%c60] : memref<82xf32, #tpu.memory_space<smem>>
    %314 = vector.broadcast %313 : f32 to vector<1x128xf32>
    %315 = arith.addf %312, %314 : vector<1x128xf32>
    %c54 = arith.constant 54 : index
    %316 = memref.load %arg1[%c54] : memref<82xf32, #tpu.memory_space<smem>>
    %317 = vector.broadcast %316 : f32 to vector<1x128xf32>
    %318 = arith.mulf %317, %275 : vector<1x128xf32>
    %c55 = arith.constant 55 : index
    %319 = memref.load %arg1[%c55] : memref<82xf32, #tpu.memory_space<smem>>
    %320 = vector.broadcast %319 : f32 to vector<1x128xf32>
    %321 = arith.mulf %320, %285 : vector<1x128xf32>
    %322 = arith.addf %318, %321 : vector<1x128xf32>
    %c61 = arith.constant 61 : index
    %323 = memref.load %arg1[%c61] : memref<82xf32, #tpu.memory_space<smem>>
    %324 = vector.broadcast %323 : f32 to vector<1x128xf32>
    %325 = arith.addf %322, %324 : vector<1x128xf32>
    %c56 = arith.constant 56 : index
    %326 = memref.load %arg1[%c56] : memref<82xf32, #tpu.memory_space<smem>>
    %327 = vector.broadcast %326 : f32 to vector<1x128xf32>
    %328 = arith.mulf %327, %275 : vector<1x128xf32>
    %c57 = arith.constant 57 : index
    %329 = memref.load %arg1[%c57] : memref<82xf32, #tpu.memory_space<smem>>
    %330 = vector.broadcast %329 : f32 to vector<1x128xf32>
    %331 = arith.mulf %330, %285 : vector<1x128xf32>
    %332 = arith.addf %328, %331 : vector<1x128xf32>
    %c62 = arith.constant 62 : index
    %333 = memref.load %arg1[%c62] : memref<82xf32, #tpu.memory_space<smem>>
    %334 = vector.broadcast %333 : f32 to vector<1x128xf32>
    %335 = arith.addf %332, %334 : vector<1x128xf32>
    %336 = math.absf %295 : vector<1x128xf32>
    %cst_55 = arith.constant 5.000000e-01 : f32
    %337 = vector.broadcast %cst_55 : f32 to vector<1x128xf32>
    %338 = arith.cmpf ogt, %336, %337 : vector<1x128xf32>
    %cst_56 = arith.constant 0.000000e+00 : f32
    %339 = vector.broadcast %cst_56 : f32 to vector<1x128xf32>
    %340 = arith.select %338, %295, %339 : vector<1x128xi1>, vector<1x128xf32>
    %341 = math.absf %305 : vector<1x128xf32>
    %cst_57 = arith.constant 5.000000e-01 : f32
    %342 = vector.broadcast %cst_57 : f32 to vector<1x128xf32>
    %343 = arith.cmpf ogt, %341, %342 : vector<1x128xf32>
    %cst_58 = arith.constant 0.000000e+00 : f32
    %344 = vector.broadcast %cst_58 : f32 to vector<1x128xf32>
    %345 = arith.select %343, %305, %344 : vector<1x128xi1>, vector<1x128xf32>
    %346 = math.absf %315 : vector<1x128xf32>
    %cst_59 = arith.constant 5.000000e-01 : f32
    %347 = vector.broadcast %cst_59 : f32 to vector<1x128xf32>
    %348 = arith.cmpf ogt, %346, %347 : vector<1x128xf32>
    %cst_60 = arith.constant 0.000000e+00 : f32
    %349 = vector.broadcast %cst_60 : f32 to vector<1x128xf32>
    %350 = arith.select %348, %315, %349 : vector<1x128xi1>, vector<1x128xf32>
    %351 = math.absf %325 : vector<1x128xf32>
    %cst_61 = arith.constant 5.000000e-01 : f32
    %352 = vector.broadcast %cst_61 : f32 to vector<1x128xf32>
    %353 = arith.cmpf ogt, %351, %352 : vector<1x128xf32>
    %cst_62 = arith.constant 0.000000e+00 : f32
    %354 = vector.broadcast %cst_62 : f32 to vector<1x128xf32>
    %355 = arith.select %353, %325, %354 : vector<1x128xi1>, vector<1x128xf32>
    %356 = math.absf %335 : vector<1x128xf32>
    %cst_63 = arith.constant 5.000000e-01 : f32
    %357 = vector.broadcast %cst_63 : f32 to vector<1x128xf32>
    %358 = arith.cmpf ogt, %356, %357 : vector<1x128xf32>
    %cst_64 = arith.constant 0.000000e+00 : f32
    %359 = vector.broadcast %cst_64 : f32 to vector<1x128xf32>
    %360 = arith.select %358, %335, %359 : vector<1x128xi1>, vector<1x128xf32>
    %c63 = arith.constant 63 : index
    %361 = memref.load %arg1[%c63] : memref<82xf32, #tpu.memory_space<smem>>
    %362 = vector.broadcast %361 : f32 to vector<1x128xf32>
    %363 = arith.mulf %362, %340 : vector<1x128xf32>
    %c64 = arith.constant 64 : index
    %364 = memref.load %arg1[%c64] : memref<82xf32, #tpu.memory_space<smem>>
    %365 = vector.broadcast %364 : f32 to vector<1x128xf32>
    %366 = arith.mulf %365, %345 : vector<1x128xf32>
    %367 = arith.addf %363, %366 : vector<1x128xf32>
    %c65 = arith.constant 65 : index
    %368 = memref.load %arg1[%c65] : memref<82xf32, #tpu.memory_space<smem>>
    %369 = vector.broadcast %368 : f32 to vector<1x128xf32>
    %370 = arith.mulf %369, %350 : vector<1x128xf32>
    %371 = arith.addf %367, %370 : vector<1x128xf32>
    %c66 = arith.constant 66 : index
    %372 = memref.load %arg1[%c66] : memref<82xf32, #tpu.memory_space<smem>>
    %373 = vector.broadcast %372 : f32 to vector<1x128xf32>
    %374 = arith.mulf %373, %355 : vector<1x128xf32>
    %375 = arith.addf %371, %374 : vector<1x128xf32>
    %c67 = arith.constant 67 : index
    %376 = memref.load %arg1[%c67] : memref<82xf32, #tpu.memory_space<smem>>
    %377 = vector.broadcast %376 : f32 to vector<1x128xf32>
    %378 = arith.mulf %377, %360 : vector<1x128xf32>
    %379 = arith.addf %375, %378 : vector<1x128xf32>
    %c73 = arith.constant 73 : index
    %380 = memref.load %arg1[%c73] : memref<82xf32, #tpu.memory_space<smem>>
    %381 = vector.broadcast %380 : f32 to vector<1x128xf32>
    %382 = arith.addf %379, %381 : vector<1x128xf32>
    %c68 = arith.constant 68 : index
    %383 = memref.load %arg1[%c68] : memref<82xf32, #tpu.memory_space<smem>>
    %384 = vector.broadcast %383 : f32 to vector<1x128xf32>
    %385 = arith.mulf %384, %340 : vector<1x128xf32>
    %c69 = arith.constant 69 : index
    %386 = memref.load %arg1[%c69] : memref<82xf32, #tpu.memory_space<smem>>
    %387 = vector.broadcast %386 : f32 to vector<1x128xf32>
    %388 = arith.mulf %387, %345 : vector<1x128xf32>
    %389 = arith.addf %385, %388 : vector<1x128xf32>
    %c70 = arith.constant 70 : index
    %390 = memref.load %arg1[%c70] : memref<82xf32, #tpu.memory_space<smem>>
    %391 = vector.broadcast %390 : f32 to vector<1x128xf32>
    %392 = arith.mulf %391, %350 : vector<1x128xf32>
    %393 = arith.addf %389, %392 : vector<1x128xf32>
    %c71 = arith.constant 71 : index
    %394 = memref.load %arg1[%c71] : memref<82xf32, #tpu.memory_space<smem>>
    %395 = vector.broadcast %394 : f32 to vector<1x128xf32>
    %396 = arith.mulf %395, %355 : vector<1x128xf32>
    %397 = arith.addf %393, %396 : vector<1x128xf32>
    %c72 = arith.constant 72 : index
    %398 = memref.load %arg1[%c72] : memref<82xf32, #tpu.memory_space<smem>>
    %399 = vector.broadcast %398 : f32 to vector<1x128xf32>
    %400 = arith.mulf %399, %360 : vector<1x128xf32>
    %401 = arith.addf %397, %400 : vector<1x128xf32>
    %c74 = arith.constant 74 : index
    %402 = memref.load %arg1[%c74] : memref<82xf32, #tpu.memory_space<smem>>
    %403 = vector.broadcast %402 : f32 to vector<1x128xf32>
    %404 = arith.addf %401, %403 : vector<1x128xf32>
    %405 = math.tanh %382 : vector<1x128xf32>
    %406 = math.tanh %404 : vector<1x128xf32>
    %c75 = arith.constant 75 : index
    %407 = memref.load %arg1[%c75] : memref<82xf32, #tpu.memory_space<smem>>
    %408 = vector.broadcast %407 : f32 to vector<1x128xf32>
    %409 = arith.mulf %408, %405 : vector<1x128xf32>
    %c76 = arith.constant 76 : index
    %410 = memref.load %arg1[%c76] : memref<82xf32, #tpu.memory_space<smem>>
    %411 = vector.broadcast %410 : f32 to vector<1x128xf32>
    %412 = arith.mulf %411, %406 : vector<1x128xf32>
    %413 = arith.addf %409, %412 : vector<1x128xf32>
    %c79 = arith.constant 79 : index
    %414 = memref.load %arg1[%c79] : memref<82xf32, #tpu.memory_space<smem>>
    %415 = vector.broadcast %414 : f32 to vector<1x128xf32>
    %416 = arith.addf %413, %415 : vector<1x128xf32>
    %c77 = arith.constant 77 : index
    %417 = memref.load %arg1[%c77] : memref<82xf32, #tpu.memory_space<smem>>
    %418 = vector.broadcast %417 : f32 to vector<1x128xf32>
    %419 = arith.mulf %418, %405 : vector<1x128xf32>
    %c78 = arith.constant 78 : index
    %420 = memref.load %arg1[%c78] : memref<82xf32, #tpu.memory_space<smem>>
    %421 = vector.broadcast %420 : f32 to vector<1x128xf32>
    %422 = arith.mulf %421, %406 : vector<1x128xf32>
    %423 = arith.addf %419, %422 : vector<1x128xf32>
    %c80 = arith.constant 80 : index
    %424 = memref.load %arg1[%c80] : memref<82xf32, #tpu.memory_space<smem>>
    %425 = vector.broadcast %424 : f32 to vector<1x128xf32>
    %426 = arith.addf %423, %425 : vector<1x128xf32>
    %427 = tpu.concatenate %416, %426 in 0 : vector<1x128xf32>, vector<1x128xf32> -> vector<2x128xf32>
    %c0_65 = arith.constant 0 : index
    %c0_66 = arith.constant 0 : index
    %428 = vector.load %arg3[%c0_65, %c0_66] : memref<2x128xf32, #tpu.memory_space<vmem>>, vector<2x128xf32>
    tpu.vector_store %arg3[%c0_65, %c0_66], %427 {strides = array<i32>} : memref<2x128xf32, #tpu.memory_space<vmem>>, vector<2x128xf32>,
    return
  }
  func.func @transform_0(%arg0: i32) -> i32 {
    %c0_i32 = arith.constant 0 : i32
    %c0_i32_0 = arith.constant 0 : i32
    return %c0_i32 : i32
  }
  func.func @transform_1(%arg0: i32) -> (i32, i32) {
    %c0_i32 = arith.constant 0 : i32
    %c0_i32_0 = arith.constant 0 : i32
    return %c0_i32, %arg0 : i32, i32
  }
  func.func @transform_2(%arg0: i32) -> (i32, i32) {
    %c0_i32 = arith.constant 0 : i32
    %c0_i32_0 = arith.constant 0 : i32
    return %c0_i32, %arg0 : i32, i32
  }
}

</mosaic_0001>

<bundles_post_ra>
// kernel: nncov2_forward.1
= control target key start
LH: loop header
LB: loop body
LE: loop exit
PB: predicated region body
PF: predicated region fallthrough
CT: control target
= control target key end

     0   :  { %7 = vsyncpa [#allocation3], 0  ;;  %s539_s12 = smov [#allocation2]   ;;  %s785_s0 = inlined_call_operand.vmem [shape: f32[82], index: 0, kind: input, shape index: {}]   ;;  %s786_s1 = inlined_call_operand.vmem [shape: f32[7,128], index: 1, kind: input, shape index: {}]   ;;  %s787_s2 = inlined_call_operand.vmem [shape: f32[2,128], index: 2, kind: output, shape index: {}]  }
   0x1   :  { %s13_s11 = sshll.u32 %s785_s0, 4  ;;  %s14_s11 = int_to_ptr.vmem [resolvable:$true] %s13_s11 }
   0x2   :  { %16 = dma.vmem_to_smem %s14_s11, 16, %s539_s12, [#allocation3]  }
   0x3   :  { %537 = dma.done.wait [#allocation3], 16  }
   0x4   :  { %538 = vsyncadd [#allocation3], 4294967280 }
   0x5   :  { %23 = sfence }
   0x6   :  { %s31_s13 = sld [smem:[#allocation2]]  ;;  %v24_v0 = vld [vmem:[%s786_s1] sm:$0x1]  ;;  %v25_v1 = vld [vmem:[%s786_s1 + $0x1] sm:$0x1]  ;;  %vm407_vm5 = vcmask 1040384  }
   0x7   :  { %s415_s14 = sld [smem:[#allocation2 + $0x1]]  ;;  %v26_v2 = vld [vmem:[%s786_s1 + $0x2] sm:$0x1]  ;;  %v27_v4 = vld [vmem:[%s786_s1 + $0x3] sm:$0x1] }
   0x8   :  { %s416_s15 = sld [smem:[#allocation2 + $0x2]]  ;;  %v28_v9 = vld [vmem:[%s786_s1 + $0x4] sm:$0x1]  ;;  %v29_v15 = vld [vmem:[%s786_s1 + $0x5] sm:$0x1] }
   0x9   :  { %s417_s16 = sld [smem:[#allocation2 + $0x3]]  ;;  %v30_v19 = vld [vmem:[%s786_s1 + $0x6] sm:$0x1] }
   0xa   :  { %s418_s19 = sld [smem:[#allocation2 + $0x4]] }
   0xb   :  { %s419_s0 = sld [smem:[#allocation2 + $0x5]] }
   0xc   :  { %v32_v3 = vstv %s31_s13  ;;  %s567_s24 = sld [smem:[#allocation2 + $0x6]] }
   0xd   :  { %v33_v5 = vmul.f32 %v32_v3, %v24_v0  ;;  %v35_v6 = vstv %s415_s14  ;;  %s572_s27 = sld [smem:[#allocation2 + $0xe]] }
   0xe   :  { %v36_v7 = vmul.f32 %v35_v6, %v25_v1  ;;  %v39_v8 = vstv %s416_s15  ;;  %s422_s28 = sld [smem:[#allocation2 + $0x7]] }
   0xf   :  { %v40_v10 = vmul.f32 %v39_v8, %v26_v2  ;;  %v43_v11 = vstv %s417_s16  ;;  %s423_s3 = sld [smem:[#allocation2 + $0x8]] }
  0x10   :  { %v37_v12 = vadd.f32 %v36_v7, %v33_v5  ;;  %v44_v13 = vmul.f32 %v43_v11, %v27_v4  ;;  %v47_v14 = vstv %s418_s19  ;;  %s424_s4 = sld [smem:[#allocation2 + $0x9]] }
  0x11   :  { %v51_v16 = vstv %s419_s0  ;;  %s425_s7 = sld [smem:[#allocation2 + $0xa]]  ;;  %v48_v18 = vmul.f32 %v47_v14, %v28_v9 }
  0x12   :  { %v41_v17 = vadd.f32 %v40_v10, %v37_v12  ;;  %s426_s8 = sld [smem:[#allocation2 + $0xb]]  ;;  %v55_v20 = vstv %s567_s24  ;;  %v52_v22 = vmul.f32 %v51_v16, %v29_v15 }
  0x13   :  { %s584_s11 = sld [smem:[#allocation2 + $0xc]]  ;;  %v56_v27 = vmul.f32 %v55_v20, %v30_v19  ;;  %v59_v36 = vstv %s572_s27 }
  0x14   :  { %v45_v21 = vadd.f32 %v44_v13, %v41_v17  ;;  %v62_v23 = vstv %s422_s28  ;;  %s586_s12 = sld [smem:[#allocation2 + $0xd]] }
  0x15   :  { %v63_v24 = vmul.f32 %v62_v23, %v24_v0  ;;  %v65_v25 = vstv %s423_s3  ;;  %s588_s13 = sld [smem:[#allocation2 + $0xf]] }
  0x16   :  { %v49_v26 = vadd.f32 %v48_v18, %v45_v21  ;;  %v66_v28 = vmul.f32 %v65_v25, %v25_v1  ;;  %v69_v29 = vstv %s424_s4  ;;  %s590_s14 = sld [smem:[#allocation2 + $0x51]] }
  0x17   :  { %v70_v30 = vmul.f32 %v69_v29, %v26_v2  ;;  %v73_v31 = vstv %s425_s7  ;;  %s592_s1 = sld [smem:[#allocation2 + $0x10]] }
  0x18   :  { %v53_v32 = vadd.f32 %v52_v22, %v49_v26  ;;  %v67_v33 = vadd.f32 %v66_v28, %v63_v24  ;;  %v74_v34 = vmul.f32 %v73_v31, %v27_v4  ;;  %v77_v35 = vstv %s426_s8  ;;  %s594_s15 = sld [smem:[#allocation2 + $0x11]] }
  0x19   :  { %v81_v37 = vstv %s584_s11  ;;  %s598_s16 = sld [smem:[#allocation2 + $0x1c]]  ;;  %v78_v40 = vmul.f32 %v77_v35, %v28_v9 }
  0x1a   :  { %v57_v38 = vadd.f32 %v56_v27, %v53_v32  ;;  %v71_v39 = vadd.f32 %v70_v30, %v67_v33  ;;  %s600_s17 = sld [smem:[#allocation2 + $0x12]]  ;;  %v85_v41 = vstv %s586_s12  ;;  %v82_v44 = vmul.f32 %v81_v37, %v29_v15 }
  0x1b   :  { %s603_s18 = sld [smem:[#allocation2 + $0x13]]  ;;  %v86_v47 = vmul.f32 %v85_v41, %v30_v19  ;;  %v89_v52 = vstv %s588_s13 }
  0x1c   :  { %v60_v42 = vadd.f32 %v59_v36, %v57_v38  ;;  %v75_v43 = vadd.f32 %v74_v34, %v71_v39  ;;  %s605_s19 = sld [smem:[#allocation2 + $0x1d]]  ;;  %v94_v45 = vstv %s590_s14 }
  0x1d   :  { %s608_s20 = sld [smem:[#allocation2 + $0x14]]  ;;  %v102_v56 = vstv %s592_s1 }
  0x1e   :  { %v79_v46 = vadd.f32 %v78_v40, %v75_v43  ;;  %v93_v48 = vmin.f32 %v60_v42, 0.0  ;;  %s610_s21 = sld [smem:[#allocation2 + $0x15]]  ;;  %v92_v50 = vmax.f32 %v60_v42, 0.0  ;;  %v105_v60 = vstv %s594_s15 }
  0x1f   :  { %s612_s0 = sld [smem:[#allocation2 + $0x1e]]  ;;  %v109_v1 = vstv %s598_s16 }
  0x20   :  { %v83_v49 = vadd.f32 %v82_v44, %v79_v46  ;;  %v95_v51 = vmul.f32 %v94_v45, %v93_v48  ;;  %s440_s22 = sld [smem:[#allocation2 + $0x16]]  ;;  %v112_v59 = vstv %s600_s17 }
  0x21   :  { %s615_s23 = sld [smem:[#allocation2 + $0x17]]  ;;  %v115_v2 = vstv %s603_s18 }
  0x22   :  { %v87_v53 = vadd.f32 %v86_v47, %v83_v49  ;;  %s617_s24 = sld [smem:[#allocation2 + $0x1f]]  ;;  %v96_v55 = vadd.f32 %v95_v51, %v92_v50  ;;  %v119_v11 = vstv %s605_s19 }
  0x23   :  { %s619_s25 = sld [smem:[#allocation2 + $0x18]]  ;;  %v122_v61 = vstv %s608_s20 }
  0x24   :  { %v90_v54 = vadd.f32 %v89_v52, %v87_v53  ;;  %s621_s26 = sld [smem:[#allocation2 + $0x19]]  ;;  %v103_v0 = vmul.f32 %v102_v56, %v96_v55  ;;  %v113_v3 = vmul.f32 %v112_v59, %v96_v55  ;;  %v125_v4 = vstv %s610_s21 }
  0x25   :  { %s624_s27 = sld [smem:[#allocation2 + $0x20]]  ;;  %v123_v8 = vmul.f32 %v122_v61, %v96_v55  ;;  %v129_v12 = vstv %s612_s0 }
  0x26   :  { %v97_v57 = vmax.f32 %v90_v54, 0.0  ;;  %v98_v58 = vmin.f32 %v90_v54, 0.0  ;;  %s627_s28 = sld [smem:[#allocation2 + $0x1a]]  ;;  %v132_v62 = vstv %s440_s22 }
  0x27   :  { %s631_s29 = sld [smem:[#allocation2 + $0x1b]]  ;;  %v135_v5 = vstv %s615_s23  ;;  %v133_v9 = vmul.f32 %v132_v62, %v96_v55 }
  0x28   :  { %v99_v63 = vmul.f32 %v98_v58, %v94_v45  ;;  %s635_s30 = sld [smem:[#allocation2 + $0x21]]  ;;  %v139_v13 = vstv %s617_s24 }
  0x29   :  { %v142_v6 = vstv %s619_s25  ;;  %s660_s3 = sld [smem:[#allocation2 + $0x22]] }
  0x2a   :  { %v100_v7 = vadd.f32 %v99_v63, %v97_v57  ;;  %v145_v10 = vstv %s621_s26  ;;  %v143_v14 = vmul.f32 %v142_v6, %v96_v55  ;;  %s665_s4 = sld [smem:[#allocation2 + $0x23]] }
  0x2b   :  { %v149_v20 = vstv %s624_s27  ;;  %s667_s5 = sld [smem:[#allocation2 + $0x24]] }
  0x2c   :  { %v106_v15 = vmul.f32 %v105_v60, %v100_v7  ;;  %v116_v16 = vmul.f32 %v115_v2, %v100_v7  ;;  %v126_v17 = vmul.f32 %v125_v4, %v100_v7  ;;  %v136_v18 = vmul.f32 %v135_v5, %v100_v7  ;;  %s669_s6 = sld [smem:[#allocation2 + $0x25]] }
  0x2d   :  { %v146_v19 = vmul.f32 %v145_v10, %v100_v7  ;;  %v152_v21 = vstv %s627_s28  ;;  %v155_v22 = vstv %s631_s29  ;;  %s671_s7 = sld [smem:[#allocation2 + $0x26]] }
  0x2e   :  { %v107_v23 = vadd.f32 %v106_v15, %v103_v0  ;;  %v117_v24 = vadd.f32 %v116_v16, %v113_v3  ;;  %v127_v25 = vadd.f32 %v126_v17, %v123_v8  ;;  %v137_v26 = vadd.f32 %v136_v18, %v133_v9  ;;  %s673_s8 = sld [smem:[#allocation2 + $0x28]] }
  0x2f   :  { %v147_v27 = vadd.f32 %v146_v19, %v143_v14  ;;  %v153_v28 = vmul.f32 %v152_v21, %v96_v55  ;;  %v156_v29 = vmul.f32 %v155_v22, %v100_v7  ;;  %v159_v30 = vstv %s635_s30  ;;  %s675_s9 = sld [smem:[#allocation2 + $0x29]] }
  0x30   :  { %v110_v31 = vadd.f32 %v109_v1, %v107_v23  ;;  %v648_v32 = vadd.f32 %v119_v11, %v117_v24  ;;  %v650_v33 = vadd.f32 %v129_v12, %v127_v25  ;;  %v652_v34 = vadd.f32 %v139_v13, %v137_v26  ;;  %s677_s10 = sld [smem:[#allocation2 + $0x2a]] }
  0x31   :  { %v654_v35 = vadd.f32 %v149_v20, %v147_v27  ;;  %v157_v36 = vadd.f32 %v156_v29, %v153_v28  ;;  %v210_v51 = vstv %s660_s3  ;;  %s680_s11 = sld [smem:[#allocation2 + $0x2b]]  ;;  %v213_v56 = vstv %s665_s4 }
  0x32   :  { %v162_v37 = vmin.f32 %v110_v31, 0.0  ;;  %v170_v38 = vmin.f32 %v648_v32, 0.0  ;;  %v178_v40 = vmin.f32 %v650_v33, 0.0  ;;  %v186_v43 = vmin.f32 %v652_v34, 0.0  ;;  %s689_s12 = sld [smem:[#allocation2 + $0x2c]] }
  0x33   :  { %v657_v39 = vadd.f32 %v159_v30, %v157_v36  ;;  %v194_v45 = vmin.f32 %v654_v35, 0.0  ;;  %v161_v53 = vmax.f32 %v110_v31, 0.0  ;;  %v169_v55 = vmax.f32 %v648_v32, 0.0  ;;  %s693_s13 = sld [smem:[#allocation2 + $0x27]] }
  0x34   :  { %v163_v41 = vmul.f32 1.442695, %v162_v37  ;;  %v171_v42 = vmul.f32 1.442695, %v170_v38  ;;  %v179_v44 = vmul.f32 1.442695, %v178_v40  ;;  %v217_v2 = vstv %s667_s5 }
  0x35   :  { %v202_v46 = vmin.f32 %v657_v39, 0.0  ;;  %v187_v47 = vmul.f32 1.442695, %v186_v43  ;;  %v195_v48 = vmul.f32 1.442695, %v194_v45  ;;  %v177_v59 = vmax.f32 %v650_v33, 0.0 }
  0x36   :  { %505 = vpow2.f32 %v163_v41  ;;  %v185_v60 = vmax.f32 %v652_v34, 0.0  ;;  %v193_v61 = vmax.f32 %v654_v35, 0.0  ;;  %v201_v1 = vmax.f32 %v657_v39, 0.0  ;;  %s696_s14 = sld [smem:[#allocation2 + $0x2d]] }
  0x37   :  { %507 = vpow2.f32 %v171_v42  ;;  %v203_v49 = vmul.f32 1.442695, %v202_v46  ;;  %v221_v6 = vstv %s669_s6  ;;  %v225_v7 = vstv %s671_s7  ;;  %s701_s1 = sld [smem:[#allocation2 + $0x2e]] }
  0x38   :  { %509 = vpow2.f32 %v179_v44  ;;  %v236_v12 = vstv %s673_s8  ;;  %v239_v16 = vstv %s675_s9  ;;  %v243_v20 = vstv %s677_s10  ;;  %s468_s15 = sld [smem:[#allocation2 + $0x2f]] }
  0x39   :  { %511 = vpow2.f32 %v187_v47  ;;  %v247_v24 = vstv %s680_s11  ;;  %v251_v36 = vstv %s689_s12  ;;  %v229_v41 = vstv %s693_s13  ;;  %s706_s16 = sld [smem:[#allocation2 + $0x30]] }
  0x3a   :  { %513 = vpow2.f32 %v195_v48  ;;  %s709_s17 = sld [smem:[#allocation2 + $0x31]] }
  0x3b   :  { %515 = vpow2.f32 %v203_v49  ;;  %s711_s18 = sld [smem:[#allocation2 + $0x3a]] }
  0x3c   :  { %v506_v50 = vpop.eup %505  ;;  %v255_v43 = vstv %s696_s14  ;;  %s713_s19 = sld [smem:[#allocation2 + $0x32]] }
  0x3d   :  { %v508_v52 = vpop.eup %507  ;;  %v449_v54 = vadd.f32 -1.0, %v506_v50  ;;  %s715_s20 = sld [smem:[#allocation2 + $0x33]] }
  0x3e   :  { %v510_v57 = vpop.eup %509  ;;  %v450_v58 = vadd.f32 -1.0, %v508_v52  ;;  %s717_s21 = sld [smem:[#allocation2 + $0x3b]] }
  0x3f   :  { %v512_v62 = vpop.eup %511  ;;  %v166_v63 = vmul.f32 1.6732632, %v449_v54  ;;  %v451_v0 = vadd.f32 -1.0, %v510_v57  ;;  %v233_v54 = vstv %s701_s1  ;;  %s719_s0 = sld [smem:[#allocation2 + $0x34]] }
  0x40   :  { %v514_v3 = vpop.eup %513  ;;  %v174_v4 = vmul.f32 1.6732632, %v450_v58  ;;  %v452_v5 = vadd.f32 -1.0, %v512_v62  ;;  %s721_s22 = sld [smem:[#allocation2 + $0x35]] }
  0x41   :  { %v516_v8 = vpop.eup %515  ;;  %v167_v9 = vadd.f32 %v166_v63, %v161_v53  ;;  %v182_v10 = vmul.f32 1.6732632, %v451_v0  ;;  %v453_v11 = vadd.f32 -1.0, %v514_v3  ;;  %s723_s23 = sld [smem:[#allocation2 + $0x3c]]  ;;  %v274_v3 = vstv %s706_s16 }
  0x42   :  { %v175_v13 = vadd.f32 %v174_v4, %v169_v55  ;;  %v190_v14 = vmul.f32 1.6732632, %v452_v5  ;;  %v454_v15 = vadd.f32 -1.0, %v516_v8  ;;  %v259_v55 = vstv %s468_s15  ;;  %s725_s24 = sld [smem:[#allocation2 + $0x36]] }
  0x43   :  { %v168_v17 = vmul.f32 1.050701, %v167_v9  ;;  %v183_v18 = vadd.f32 %v182_v10, %v177_v59  ;;  %v198_v19 = vmul.f32 1.6732632, %v453_v11  ;;  %s727_s25 = sld [smem:[#allocation2 + $0x37]]  ;;  %v284_v8 = vstv %s713_s19 }
  0x44   :  { %v176_v21 = vmul.f32 1.050701, %v175_v13  ;;  %v191_v22 = vadd.f32 %v190_v14, %v185_v60  ;;  %v206_v23 = vmul.f32 1.6732632, %v454_v15  ;;  %s729_s26 = sld [smem:[#allocation2 + $0x38]]  ;;  %v287_v10 = vstv %s715_s20 }
  0x45   :  { %v184_v25 = vmul.f32 1.050701, %v183_v18  ;;  %v199_v26 = vadd.f32 %v198_v19, %v193_v61  ;;  %v211_v27 = vmul.f32 %v210_v51, %v168_v17  ;;  %v237_v28 = vmul.f32 %v236_v12, %v168_v17  ;;  %s731_s27 = sld [smem:[#allocation2 + $0x39]] }
  0x46   :  { %v192_v29 = vmul.f32 1.050701, %v191_v22  ;;  %v207_v30 = vadd.f32 %v206_v23, %v201_v1  ;;  %v214_v31 = vmul.f32 %v213_v56, %v176_v21  ;;  %v240_v32 = vmul.f32 %v239_v16, %v176_v21  ;;  %s733_s28 = sld [smem:[#allocation2 + $0x3d]] }
  0x47   :  { %v200_v33 = vmul.f32 1.050701, %v199_v26  ;;  %v218_v34 = vmul.f32 %v217_v2, %v184_v25  ;;  %v244_v35 = vmul.f32 %v243_v20, %v184_v25  ;;  %s735_s29 = sld [smem:[#allocation2 + $0x3e]]  ;;  %v294_v11 = vstv %s719_s0 }
  0x48   :  { %v208_v37 = vmul.f32 1.050701, %v207_v30  ;;  %v215_v38 = vadd.f32 %v214_v31, %v211_v27  ;;  %v222_v39 = vmul.f32 %v221_v6, %v192_v29  ;;  %v241_v40 = vadd.f32 %v240_v32, %v237_v28  ;;  %s737_s30 = sld [smem:[#allocation2 + $0x3f]] }
  0x49   :  { %v248_v42 = vmul.f32 %v247_v24, %v192_v29  ;;  %v226_v45 = vmul.f32 %v225_v7, %v200_v33  ;;  %v252_v47 = vmul.f32 %v251_v36, %v200_v33  ;;  %s740_s3 = sld [smem:[#allocation2 + $0x40]]  ;;  %v277_v6 = vstv %s709_s17 }
  0x4a   :  { %v219_v44 = vadd.f32 %v218_v34, %v215_v38  ;;  %v245_v46 = vadd.f32 %v244_v35, %v241_v40  ;;  %v230_v49 = vmul.f32 %v229_v41, %v208_v37  ;;  %v256_v51 = vmul.f32 %v255_v43, %v208_v37  ;;  %s745_s4 = sld [smem:[#allocation2 + $0x41]] }
  0x4b   :  { %v281_v7 = vstv %s711_s18  ;;  %v304_v12 = vstv %s725_s24  ;;  %s750_s5 = sld [smem:[#allocation2 + $0x42]]  ;;  %v291_v14 = vstv %s717_s21  ;;  %v297_v15 = vstv %s721_s22 }
  0x4c   :  { %v223_v48 = vadd.f32 %v222_v39, %v219_v44  ;;  %v249_v50 = vadd.f32 %v248_v42, %v245_v46  ;;  %v307_v16 = vstv %s727_s25  ;;  %s755_s6 = sld [smem:[#allocation2 + $0x43]]  ;;  %v301_v18 = vstv %s723_s23 }
  0x4d   :  { %v314_v19 = vstv %s729_s26  ;;  %v317_v20 = vstv %s731_s27  ;;  %s760_s7 = sld [smem:[#allocation2 + $0x44]]  ;;  %v311_v29 = vstv %s733_s28  ;;  %v321_v32 = vstv %s735_s29 }
  0x4e   :  { %v227_v52 = vadd.f32 %v226_v45, %v223_v48  ;;  %v253_v53 = vadd.f32 %v252_v47, %v249_v50  ;;  %s762_s8 = sld [smem:[#allocation2 + $0x45]]  ;;  %v339_v38 = vstv %s737_s30 }
  0x4f   :  { %s764_s9 = sld [smem:[#allocation2 + $0x46]]  ;;  %v342_v44 = vstv %s740_s3 }
  0x50   :  { %v231_v56 = vadd.f32 %v230_v49, %v227_v52  ;;  %v257_v57 = vadd.f32 %v256_v51, %v253_v53  ;;  %s769_s10 = sld [smem:[#allocation2 + $0x47]]  ;;  %v346_v45 = vstv %s745_s4 }
  0x51   :  { %v350_v46 = vstv %s750_s5  ;;  %s774_s11 = sld [smem:[#allocation2 + $0x48]] }
  0x52   :  { %v234_v58 = vadd.f32 %v233_v54, %v231_v56  ;;  %v260_v59 = vadd.f32 %v259_v55, %v257_v57  ;;  %v354_v50 = vstv %s755_s6  ;;  %s491_s12 = sld [smem:[#allocation2 + $0x49]] }
  0x53   :  { %v361_v53 = vstv %s760_s7  ;;  %s497_s13 = sld [smem:[#allocation2 + $0x4a]] }
  0x54   :  { %v262_v60 = vmin.f32 %v234_v58, 0.0  ;;  %v268_v61 = vmin.f32 %v260_v59, 0.0  ;;  %v261_v0 = vmax.f32 %v234_v58, 0.0  ;;  %v267_v2 = vmax.f32 %v260_v59, 0.0  ;;  %s498_s14 = sld [smem:[#allocation2 + $0x4b]] }
  0x55   :  { %v364_v54 = vstv %s762_s8  ;;  %v368_v55 = vstv %s764_s9  ;;  %s501_s1 = sld [smem:[#allocation2 + $0x4d]] }
  0x56   :  { %v263_v62 = vmul.f32 1.442695, %v262_v60  ;;  %v269_v63 = vmul.f32 1.442695, %v268_v61  ;;  %s499_s15 = sld [smem:[#allocation2 + $0x4c]] }
  0x57   :  { %s502_s16 = sld [smem:[#allocation2 + $0x4e]] }
  0x58   :  { %517 = vpow2.f32 %v263_v62  ;;  %s500_s17 = sld [smem:[#allocation2 + $0x4f]] }
  0x59   :  { %519 = vpow2.f32 %v269_v63  ;;  %s503_s18 = sld [smem:[#allocation2 + $0x50]] }
  0x5e   :  { %v518_v1 = vpop.eup %517 }
  0x5f   :  { %v520_v4 = vpop.eup %519  ;;  %v469_v5 = vadd.f32 -1.0, %v518_v1  ;;  %v372_v1 = vstv %s769_s10 }
  0x60   :  { %v470_v9 = vadd.f32 -1.0, %v520_v4 }
  0x61   :  { %v266_v13 = vadd.f32 %v469_v5, %v261_v0 }
  0x62   :  { %v272_v17 = vadd.f32 %v470_v9, %v267_v2 }
  0x63   :  { %v275_v21 = vmul.f32 %v274_v3, %v266_v13  ;;  %v285_v22 = vmul.f32 %v284_v8, %v266_v13  ;;  %v295_v23 = vmul.f32 %v294_v11, %v266_v13  ;;  %v305_v24 = vmul.f32 %v304_v12, %v266_v13 }
  0x64   :  { %v278_v25 = vmul.f32 %v277_v6, %v272_v17  ;;  %v288_v26 = vmul.f32 %v287_v10, %v272_v17  ;;  %v298_v27 = vmul.f32 %v297_v15, %v272_v17  ;;  %v308_v28 = vmul.f32 %v307_v16, %v272_v17 }
  0x65   :  { %v315_v30 = vmul.f32 %v314_v19, %v266_v13  ;;  %v318_v31 = vmul.f32 %v317_v20, %v272_v17  ;;  %v376_v6 = vstv %s774_s11  ;;  %v380_v17 = vstv %s497_s13 }
  0x66   :  { %v279_v33 = vadd.f32 %v278_v25, %v275_v21  ;;  %v289_v34 = vadd.f32 %v288_v26, %v285_v22  ;;  %v299_v35 = vadd.f32 %v298_v27, %v295_v23  ;;  %v309_v36 = vadd.f32 %v308_v28, %v305_v24 }
  0x67   :  { %v319_v37 = vadd.f32 %v318_v31, %v315_v30  ;;  %v385_v21 = vstv %s498_s14  ;;  %v395_v22 = vstv %s501_s1  ;;  %v388_v24 = vstv %s499_s15 }
  0x68   :  { %v282_v39 = vadd.f32 %v281_v7, %v279_v33  ;;  %v292_v40 = vadd.f32 %v291_v14, %v289_v34  ;;  %v302_v41 = vadd.f32 %v301_v18, %v299_v35  ;;  %v312_v42 = vadd.f32 %v311_v29, %v309_v36 }
  0x69   :  { %v322_v43 = vadd.f32 %v321_v32, %v319_v37  ;;  %v358_v14 = vstv %s491_s12  ;;  %v398_v25 = vstv %s502_s16  ;;  %v392_v31 = vstv %s500_s17 }
  0x6a   :  { %v323_v47 = vand.u32 2147483647, %v282_v39  ;;  %v326_v48 = vand.u32 2147483647, %v292_v40  ;;  %v329_v49 = vand.u32 2147483647, %v302_v41  ;;  %v402_v32 = vstv %s503_s18 }
  0x6b   :  { %v332_v51 = vand.u32 2147483647, %v312_v42  ;;  %v335_v52 = vand.u32 2147483647, %v322_v43 }
  0x6c   :  { %vm324_vm0 = vcmp.gt.f32.partialorder %v323_v47, 0.5  ;;  %vm327_vm1 = vcmp.gt.f32.partialorder %v326_v48, 0.5  ;;  %vm330_vm2 = vcmp.gt.f32.partialorder %v329_v49, 0.5 }
  0x6d   :  { %v325_v56 = vsel %vm324_vm0, %v282_v39, 0.0  ;;  %v328_v57 = vsel %vm327_vm1, %v292_v40, 0.0  ;;  %v331_v58 = vsel %vm330_vm2, %v302_v41, 0.0  ;;  %vm333_vm3 = vcmp.gt.f32.partialorder %v332_v51, 0.5 }
  0x6e   :  { %v334_v59 = vsel %vm333_vm3, %v312_v42, 0.0  ;;  %vm336_vm4 = vcmp.gt.f32.partialorder %v335_v52, 0.5  ;;  %v340_v60 = vmul.f32 %v339_v38, %v325_v56  ;;  %v343_v61 = vmul.f32 %v342_v44, %v328_v57 }
  0x6f   :  { %v337_v62 = vsel %vm336_vm4, %v322_v43, 0.0  ;;  %v347_v63 = vmul.f32 %v346_v45, %v331_v58  ;;  %v362_v0 = vmul.f32 %v361_v53, %v325_v56  ;;  %v351_v3 = vmul.f32 %v350_v46, %v334_v59 }
  0x70   :  { %v344_v2 = vadd.f32 %v343_v61, %v340_v60  ;;  %v365_v4 = vmul.f32 %v364_v54, %v328_v57  ;;  %v369_v5 = vmul.f32 %v368_v55, %v331_v58  ;;  %v355_v8 = vmul.f32 %v354_v50, %v337_v62 }
  0x71   :  { %v373_v10 = vmul.f32 %v372_v1, %v334_v59  ;;  %v377_v13 = vmul.f32 %v376_v6, %v337_v62 }
  0x72   :  { %v348_v7 = vadd.f32 %v347_v63, %v344_v2  ;;  %v366_v9 = vadd.f32 %v365_v4, %v362_v0 }
  0x74   :  { %v352_v11 = vadd.f32 %v351_v3, %v348_v7  ;;  %v370_v12 = vadd.f32 %v369_v5, %v366_v9 }
  0x76   :  { %v356_v15 = vadd.f32 %v355_v8, %v352_v11  ;;  %v374_v16 = vadd.f32 %v373_v10, %v370_v12 }
  0x78   :  { %v359_v18 = vadd.f32 %v358_v14, %v356_v15  ;;  %v378_v19 = vadd.f32 %v377_v13, %v374_v16 }
  0x7a   :  { %v381_v20 = vadd.f32 %v380_v17, %v378_v19  ;;  %521 = vtanh.f32 %v359_v18 }
  0x7c   :  { %523 = vtanh.f32 %v381_v20 }
  0x80   :  { %v522_v23 = vpop.eup %521 }
  0x81   :  { %v386_v26 = vmul.f32 %v522_v23, %v385_v21  ;;  %v396_v27 = vmul.f32 %v522_v23, %v395_v22 }
  0x82   :  { %v524_v28 = vpop.eup %523 }
  0x83   :  { %v389_v29 = vmul.f32 %v524_v28, %v388_v24  ;;  %v399_v30 = vmul.f32 %v524_v28, %v398_v25 }
  0x85   :  { %v390_v33 = vadd.f32 %v389_v29, %v386_v26  ;;  %v400_v34 = vadd.f32 %v399_v30, %v396_v27 }
  0x87   :  { %v393_v35 = vadd.f32 %v392_v31, %v390_v33  ;;  %v403_v36 = vadd.f32 %v402_v32, %v400_v34 }
  0x89   :  { %v405_v37 = vrot.slane %v403_v36, 7 }
  0x8b   :  { %v408_v38 = vsel %vm407_vm5, %v393_v35, %v405_v37 }
  0x8c   :  { %409 = vst [vmem:[%s787_s2] sm:$0x3] %v408_v38 }
  0x8d   :  { %414 = vsyncpa [#allocation3], 1 }

</bundles_post_ra>
